<compile_context>
chip_gen: v5e
topology: v5e:2x2
jax: 0.10.0
libtpu: 0.0.40
codegen_flags: <defaults>
</compile_context>

<pallas_src>
import jax
import jax.numpy as jnp
from jax.experimental import pallas as pl
from jax.experimental.pallas import tpu as pltpu


# ----------------------------------------------------------------------------
# Pallas kernel: one mode-block = one full-width MXU matmul.
# ----------------------------------------------------------------------------
def _spectral_block_matmul_kernel(x_ref, w_ref, o_ref):
    # x_ref: (Bp, 2*k*Ci)   w_ref: (2*k*Ci, 2*k*Co)   o_ref: (Bp, 2*k*Co)
    # Real/imag are merged in the operands (complex-as-2x2-real weight), so a
    # single jnp.dot produces [real | imag] outputs for all k modes, lane-dense.
    o_ref[...] = jnp.dot(
        x_ref[...], w_ref[...], preferred_element_type=jnp.float32
    ).astype(o_ref.dtype)


# ----------------------------------------------------------------------------
# Init-time helpers (hoisted out of the forward pass per perf review).
# ----------------------------------------------------------------------------
def choose_block_modes(in_channels, modes1, modes2, target_width=256):
    """Modes per block so the matmul contraction width 2*k*Ci >= target_width."""
    M = 2 * modes1 * modes2
    k = max(1, pl.cdiv(target_width, 2 * in_channels))
    return min(k, M)


def pack_spectral_weights(w1_re, w1_im, w2_re, w2_im, block_modes,
                          dtype=jnp.float32):
    """Pre-pack (Ci, Co, m1, m2) complex weights into the kernel layout.

    Returns (n_blocks, 2*k*Ci, 2*k*Co): per mode-block, a block-diagonal matrix
    whose j-th diagonal block is the 2x2 complex-as-real form
    [[wr, wi], [-wi, wr]] of mode j's (Ci, Co) weight.  Built ONCE at init.
    For v6e/v7x production use dtype=jnp.bfloat16 (MXU-native, ~3x throughput).
    """
    Ci, Co, m1, m2 = w1_re.shape
    M = 2 * m1 * m2
    k = block_modes
    n_blocks = pl.cdiv(M, k)
    Mp = n_blocks * k

    # (Ci, Co, 2*m1, m2) -> mode-major (M, Ci, Co).
    wr = jnp.concatenate([w1_re, w2_re], axis=2)
    wi = jnp.concatenate([w1_im, w2_im], axis=2)
    wr = jnp.transpose(wr, (2, 3, 0, 1)).reshape(M, Ci, Co)
    wi = jnp.transpose(wi, (2, 3, 0, 1)).reshape(M, Ci, Co)

    # Complex multiply as a real 2x2 block:  [xr xi] @ [[wr, wi], [-wi, wr]].
    w22 = jnp.concatenate(
        [jnp.concatenate([wr, wi], axis=2),
         jnp.concatenate([-wi, wr], axis=2)],
        axis=1)                                            # (M, 2Ci, 2Co)

    # Pad modes to whole blocks, then block-diagonalize k modes per block.
    w22 = jnp.pad(w22, ((0, Mp - M), (0, 0), (0, 0)))
    w22 = w22.reshape(n_blocks, k, 2 * Ci, 2 * Co)
    eye = jnp.eye(k, dtype=w22.dtype)
    w_bd = jnp.einsum('nkab,kl->nkalb', w22, eye)          # zero off-diagonal
    w_bd = w_bd.reshape(n_blocks, k * 2 * Ci, k * 2 * Co)
    return w_bd.astype(dtype)


# ----------------------------------------------------------------------------
# Forward pass (FFT glue in plain JAX, channel contraction in Pallas).
# ----------------------------------------------------------------------------
def spectral_conv2d(x, w_packed, *, modes1, modes2, block_modes):
    """x: (B, Ci, H, W) float32.  w_packed: output of pack_spectral_weights."""
    B, Ci, H, W = x.shape
    k = block_modes
    n_blocks, Kw, Nw = w_packed.shape
    assert Kw == 2 * k * Ci
    Co = Nw // (2 * k)
    M = 2 * modes1 * modes2
    Mp = n_blocks * k
    Bp = pl.cdiv(B, 8) * 8
    Wf = W // 2 + 1

    # TODO(synk): rfft2 / irfft2 stay as XLA FFT ops (no Pallas TPU FFT).
    x_ft = jnp.fft.rfft2(x)                                 # (B, Ci, H, Wf) c64

    # Kept modes (top m1 rows + bottom m1 rows), mode-major: (M, B, Ci).
    xk = jnp.concatenate(
        [x_ft[:, :, :modes1, :modes2], x_ft[:, :, H - modes1:, :modes2]],
        axis=2)                                             # (B, Ci, 2m1, m2)
    xk = jnp.transpose(xk, (2, 3, 0, 1)).reshape(M, B, Ci)

    # [Re | Im] on the channel axis (matches the 2x2 weight layout), then fold
    # k modes into the lane axis: (n_blocks, Bp, 2*k*Ci) — lane-dense.
    x2 = jnp.concatenate([jnp.real(xk), jnp.imag(xk)], axis=2)
    x2 = jnp.pad(x2, ((0, Mp - M), (0, Bp - B), (0, 0))).astype(w_packed.dtype)
    xp = x2.reshape(n_blocks, k, Bp, 2 * Ci)
    xp = jnp.transpose(xp, (0, 2, 1, 3)).reshape(n_blocks, Bp, Kw)

    out_p = pl.pallas_call(
        _spectral_block_matmul_kernel,
        grid=(n_blocks,),
        in_specs=[
            pl.BlockSpec((None, Bp, Kw), lambda nb: (nb, 0, 0)),
            pl.BlockSpec((None, Kw, Nw), lambda nb: (nb, 0, 0)),
        ],
        out_specs=pl.BlockSpec((None, Bp, Nw), lambda nb: (nb, 0, 0)),
        out_shape=jax.ShapeDtypeStruct((n_blocks, Bp, Nw), jnp.float32),
        compiler_params=pltpu.CompilerParams(
            dimension_semantics=("parallel",)),
    )(xp, w_packed)

    # Unpack (n_blocks, Bp, k*2*Co) -> complex (B, Co, 2*m1, m2).
    out_p = out_p.reshape(n_blocks, Bp, k, 2, Co)[:, :B]
    out_p = jnp.transpose(out_p, (0, 2, 3, 1, 4)).reshape(Mp, 2, B, Co)[:M]
    out_c = jax.lax.complex(out_p[:, 0], out_p[:, 1])       # (M, B, Co)
    out_c = jnp.transpose(out_c.reshape(2 * modes1, modes2, B, Co), (2, 3, 0, 1))

    # Scatter kept modes into the full spectrum and invert.
    out_ft = jnp.zeros((B, Co, H, Wf), dtype=jnp.complex64)
    out_ft = out_ft.at[:, :, :modes1, :modes2].set(out_c[:, :, :modes1])
    out_ft = out_ft.at[:, :, H - modes1:, :modes2].set(out_c[:, :, modes1:])
    return jnp.fft.irfft2(out_ft, s=(H, W))                 # (B, Co, H, W) f32


# ----------------------------------------------------------------------------
# Main: deterministic params + input, run once, verify, print KERNEL_OK.
# ----------------------------------------------------------------------------
if __name__ == "__main__":
    B, Ci, Co = 2, 4, 4
    H = W = 16
    modes1 = modes2 = 4

    key = jax.random.PRNGKey(0)
    k_x, k1r, k1i, k2r, k2i = jax.random.split(key, 5)

    scale = 1.0 / (Ci * Co)
    # torch.rand(..., dtype=cfloat): real & imag each uniform [0, 1), scaled.
    w1_re = scale * jax.random.uniform(k1r, (Ci, Co, modes1, modes2), jnp.float32)
    w1_im = scale * jax.random.uniform(k1i, (Ci, Co, modes1, modes2), jnp.float32)
    w2_re = scale * jax.random.uniform(k2r, (Ci, Co, modes1, modes2), jnp.float32)
    w2_im = scale * jax.random.uniform(k2i, (Ci, Co, modes1, modes2), jnp.float32)

    x = jax.random.normal(k_x, (B, Ci, H, W), jnp.float32)

    # Hoisted to init: block size + block-diagonal complex-as-real weight pack.
    block_modes = choose_block_modes(Ci, modes1, modes2)      # -> 32 here
    w_packed = pack_spectral_weights(w1_re, w1_im, w2_re, w2_im, block_modes,
                                     dtype=jnp.float32)
    # (v6e/v7x production: dtype=jnp.bfloat16 above for ~3x MXU throughput;
    #  kept f32 here to satisfy the 1e-4 comparison against the f32 reference.)

    fwd = jax.jit(spectral_conv2d,
                  static_argnames=("modes1", "modes2", "block_modes"))
    out = fwd(x, w_packed, modes1=modes1, modes2=modes2, block_modes=block_modes)
    out = jax.block_until_ready(out)

    # Pure-JAX reference (same math, no Pallas).
    w1 = w1_re + 1j * w1_im
    w2 = w2_re + 1j * w2_im
    x_ft = jnp.fft.rfft2(x)
    out_ft_ref = jnp.zeros((B, Co, H, W // 2 + 1), dtype=jnp.complex64)
    out_ft_ref = out_ft_ref.at[:, :, :modes1, :modes2].set(
        jnp.einsum("bixy,ioxy->boxy", x_ft[:, :, :modes1, :modes2], w1))
    out_ft_ref = out_ft_ref.at[:, :, H - modes1:, :modes2].set(
        jnp.einsum("bixy,ioxy->boxy", x_ft[:, :, H - modes1:, :modes2], w2))
    ref = jnp.fft.irfft2(out_ft_ref, s=(H, W))

    assert out.shape == (B, Co, H, W)
    assert jnp.allclose(out, ref, atol=1e-4, rtol=1e-4)

    print("KERNEL_OK")
</pallas_src>

<mosaic_0001>
module attributes {stable_mosaic.version = 11 : i64} {
  func.func @_spectral_block_matmul_kernel(%arg0: i32, %arg1: memref<1x8x256xf32, #tpu.memory_space<vmem>>, %arg2: memref<1x256x256xf32, #tpu.memory_space<vmem>>, %arg3: memref<1x8x256xf32, #tpu.memory_space<vmem>>) attributes {dimension_semantics = [#tpu.dimension_semantics<parallel>], iteration_bounds = array<i64: 1>, scalar_prefetch = 0 : i64, scratch_operands = 0 : i64, tpu.core_type = #tpu.core_type<tc>, window_params = [{transform_indices = @transform_0, window_bounds = array<i64: 1, 8, 256>}, {transform_indices = @transform_1, window_bounds = array<i64: 1, 256, 256>}, {transform_indices = @transform_2, window_bounds = array<i64: 1, 8, 256>}]} {
    %c0 = arith.constant 0 : index
    %c0_0 = arith.constant 0 : index
    %c0_1 = arith.constant 0 : index
    %0 = vector.load %arg1[%c0, %c0_0, %c0_1] : memref<1x8x256xf32, #tpu.memory_space<vmem>>, vector<1x8x256xf32>
    %1 = vector.shape_cast %0 : vector<1x8x256xf32> to vector<8x256xf32>
    %c0_2 = arith.constant 0 : index
    %c0_3 = arith.constant 0 : index
    %c0_4 = arith.constant 0 : index
    %2 = vector.load %arg2[%c0_2, %c0_3, %c0_4] : memref<1x256x256xf32, #tpu.memory_space<vmem>>, vector<1x256x256xf32>
    %3 = vector.shape_cast %2 : vector<1x256x256xf32> to vector<256x256xf32>
    %cst = arith.constant dense<0.000000e+00> : vector<8x256xf32>
    %4 = tpu.matmul %1, %3, %cst {dimension_numbers = #tpu.dot_dimension_numbers<[1], [0], [0], [1], [0, 0, 1, 1], [], []>} : vector<8x256xf32>, vector<256x256xf32>, vector<8x256xf32> -> vector<8x256xf32>
    %c0_5 = arith.constant 0 : index
    %c0_6 = arith.constant 0 : index
    %c0_7 = arith.constant 0 : index
    %5 = vector.load %arg3[%c0_5, %c0_6, %c0_7] : memref<1x8x256xf32, #tpu.memory_space<vmem>>, vector<1x8x256xf32>
    %6 = vector.shape_cast %5 : vector<1x8x256xf32> to vector<8x256xf32>
    %7 = vector.shape_cast %4 : vector<8x256xf32> to vector<1x8x256xf32>
    tpu.vector_store %arg3[%c0_5, %c0_6, %c0_7], %7 {strides = array<i32>} : memref<1x8x256xf32, #tpu.memory_space<vmem>>, vector<1x8x256xf32>,
    return
  }
  func.func @transform_0(%arg0: i32) -> (i32, i32, i32) {
    %c0_i32 = arith.constant 0 : i32
    %c0_i32_0 = arith.constant 0 : i32
    %c0_i32_1 = arith.constant 0 : i32
    return %arg0, %c0_i32, %c0_i32_0 : i32, i32, i32
  }
  func.func @transform_1(%arg0: i32) -> (i32, i32, i32) {
    %c0_i32 = arith.constant 0 : i32
    %c0_i32_0 = arith.constant 0 : i32
    %c0_i32_1 = arith.constant 0 : i32
    return %arg0, %c0_i32, %c0_i32_0 : i32, i32, i32
  }
  func.func @transform_2(%arg0: i32) -> (i32, i32, i32) {
    %c0_i32 = arith.constant 0 : i32
    %c0_i32_0 = arith.constant 0 : i32
    %c0_i32_1 = arith.constant 0 : i32
    return %arg0, %c0_i32, %c0_i32_0 : i32, i32, i32
  }
}

</mosaic_0001>

<bundles_post_ra>
// kernel: spectral_conv2d.1
= control target key start
LH: loop header
LB: loop body
LE: loop exit
PB: predicated region body
PF: predicated region fallthrough
CT: control target
= control target key end

     0   :  { %s382_s1 = inlined_call_operand.vmem [shape: f32[1,256,256], index: 1, kind: input, shape index: {}]   ;;  %s383_s0 = inlined_call_operand.vmem [shape: f32[1,8,256], index: 0, kind: input, shape index: {}]   ;;  %s384_s2 = inlined_call_operand.vmem [shape: f32[1,8,256], index: 2, kind: output, shape index: {}]  }
   0x1   :  { %v44_v0 = vld [vmem:[%s382_s1 + $0xf8] sm:$0xff]  ;;  %v42_v2 = vld [vmem:[%s382_s1 + $0xe8] sm:$0xff]  ;;  %v43_v6 = vld [vmem:[%s382_s1 + $0xf0] sm:$0xff] }
   0x2   :  { %v76_v1 = vld [vmem:[%s382_s1 + $0x1f8] sm:$0xff]  ;;  %117 = vmatpush.msra.mxu2 %v44_v0  ;;  %v74_v3 = vld [vmem:[%s382_s1 + $0x1e8] sm:$0xff]  ;;  %v75_v7 = vld [vmem:[%s382_s1 + $0x1f0] sm:$0xff]  ;;  %77 = vmatpush.msra.mxu0 %v43_v6 }
   0x3   :  { %137 = vmatpush.msra.mxu3 %v76_v1  ;;  %v40_v4 = vld [vmem:[%s382_s1 + $0xd8] sm:$0xff]  ;;  %v41_v8 = vld [vmem:[%s382_s1 + $0xe0] sm:$0xff]  ;;  %97 = vmatpush.msra.mxu1 %v75_v7  ;;  %v38_v10 = vld [vmem:[%s382_s1 + $0xc8] sm:$0xff] }
   0x4   :  { %v72_v5 = vld [vmem:[%s382_s1 + $0x1d8] sm:$0xff]  ;;  %118 = vmatpush.msra.mxu2 %v42_v2  ;;  %v73_v9 = vld [vmem:[%s382_s1 + $0x1e0] sm:$0xff]  ;;  %v70_v11 = vld [vmem:[%s382_s1 + $0x1c8] sm:$0xff]  ;;  %78 = vmatpush.msra.mxu0 %v41_v8 }
   0x5   :  { %138 = vmatpush.msra.mxu3 %v74_v3  ;;  %v39_v12 = vld [vmem:[%s382_s1 + $0xd0] sm:$0xff]  ;;  %98 = vmatpush.msra.mxu1 %v73_v9  ;;  %v36_v14 = vld [vmem:[%s382_s1 + $0xb8] sm:$0xff]  ;;  %v37_v16 = vld [vmem:[%s382_s1 + $0xc0] sm:$0xff] }
   0x6   :  { %119 = vmatpush.msra.mxu2 %v40_v4  ;;  %v71_v13 = vld [vmem:[%s382_s1 + $0x1d0] sm:$0xff]  ;;  %v68_v15 = vld [vmem:[%s382_s1 + $0x1b8] sm:$0xff]  ;;  %v69_v17 = vld [vmem:[%s382_s1 + $0x1c0] sm:$0xff]  ;;  %79 = vmatpush.msra.mxu0 %v39_v12 }
   0x7   :  { %139 = vmatpush.msra.mxu3 %v72_v5  ;;  %99 = vmatpush.msra.mxu1 %v71_v13  ;;  %v34_v18 = vld [vmem:[%s382_s1 + $0xa8] sm:$0xff]  ;;  %v35_v20 = vld [vmem:[%s382_s1 + $0xb0] sm:$0xff]  ;;  %v32_v22 = vld [vmem:[%s382_s1 + $0x98] sm:$0xff] }
   0x8   :  { %120 = vmatpush.msra.mxu2 %v38_v10  ;;  %v66_v19 = vld [vmem:[%s382_s1 + $0x1a8] sm:$0xff]  ;;  %v67_v21 = vld [vmem:[%s382_s1 + $0x1b0] sm:$0xff]  ;;  %80 = vmatpush.msra.mxu0 %v37_v16  ;;  %v64_v23 = vld [vmem:[%s382_s1 + $0x198] sm:$0xff] }
   0x9   :  { %140 = vmatpush.msra.mxu3 %v70_v11  ;;  %100 = vmatpush.msra.mxu1 %v69_v17  ;;  %v33_v24 = vld [vmem:[%s382_s1 + $0xa0] sm:$0xff]  ;;  %v30_v26 = vld [vmem:[%s382_s1 + $0x88] sm:$0xff]  ;;  %v31_v28 = vld [vmem:[%s382_s1 + $0x90] sm:$0xff] }
   0xa   :  { %121 = vmatpush.msra.mxu2 %v36_v14  ;;  %v65_v25 = vld [vmem:[%s382_s1 + $0x1a0] sm:$0xff]  ;;  %81 = vmatpush.msra.mxu0 %v35_v20  ;;  %v62_v27 = vld [vmem:[%s382_s1 + $0x188] sm:$0xff]  ;;  %v63_v29 = vld [vmem:[%s382_s1 + $0x190] sm:$0xff] }
   0xb   :  { %141 = vmatpush.msra.mxu3 %v68_v15  ;;  %101 = vmatpush.msra.mxu1 %v67_v21  ;;  %v28_v30 = vld [vmem:[%s382_s1 + $0x78] sm:$0xff]  ;;  %v29_v32 = vld [vmem:[%s382_s1 + $0x80] sm:$0xff]  ;;  %v26_v34 = vld [vmem:[%s382_s1 + $0x68] sm:$0xff] }
   0xc   :  { %122 = vmatpush.msra.mxu2 %v34_v18  ;;  %82 = vmatpush.msra.mxu0 %v33_v24  ;;  %v60_v31 = vld [vmem:[%s382_s1 + $0x178] sm:$0xff]  ;;  %v61_v33 = vld [vmem:[%s382_s1 + $0x180] sm:$0xff]  ;;  %v58_v35 = vld [vmem:[%s382_s1 + $0x168] sm:$0xff] }
   0xd   :  { %142 = vmatpush.msra.mxu3 %v66_v19  ;;  %102 = vmatpush.msra.mxu1 %v65_v25  ;;  %v27_v36 = vld [vmem:[%s382_s1 + $0x70] sm:$0xff]  ;;  %v24_v38 = vld [vmem:[%s382_s1 + $0x58] sm:$0xff]  ;;  %v25_v40 = vld [vmem:[%s382_s1 + $0x60] sm:$0xff] }
   0xe   :  { %123 = vmatpush.msra.mxu2 %v32_v22  ;;  %83 = vmatpush.msra.mxu0 %v31_v28  ;;  %v59_v37 = vld [vmem:[%s382_s1 + $0x170] sm:$0xff]  ;;  %v56_v39 = vld [vmem:[%s382_s1 + $0x158] sm:$0xff]  ;;  %v57_v41 = vld [vmem:[%s382_s1 + $0x160] sm:$0xff] }
   0xf   :  { %143 = vmatpush.msra.mxu3 %v64_v23  ;;  %103 = vmatpush.msra.mxu1 %v63_v29  ;;  %v22_v42 = vld [vmem:[%s382_s1 + $0x48] sm:$0xff]  ;;  %v23_v44 = vld [vmem:[%s382_s1 + $0x50] sm:$0xff]  ;;  %v20_v46 = vld [vmem:[%s382_s1 + $0x38] sm:$0xff] }
  0x10   :  { %124 = vmatpush.msra.mxu2 %v30_v26  ;;  %84 = vmatpush.msra.mxu0 %v29_v32  ;;  %v54_v43 = vld [vmem:[%s382_s1 + $0x148] sm:$0xff]  ;;  %v55_v45 = vld [vmem:[%s382_s1 + $0x150] sm:$0xff]  ;;  %v52_v47 = vld [vmem:[%s382_s1 + $0x138] sm:$0xff] }
  0x11   :  { %144 = vmatpush.msra.mxu3 %v62_v27  ;;  %104 = vmatpush.msra.mxu1 %v61_v33  ;;  %v21_v48 = vld [vmem:[%s382_s1 + $0x40] sm:$0xff]  ;;  %v18_v50 = vld [vmem:[%s382_s1 + $0x28] sm:$0xff]  ;;  %v19_v52 = vld [vmem:[%s382_s1 + $0x30] sm:$0xff] }
  0x12   :  { %125 = vmatpush.msra.mxu2 %v28_v30  ;;  %85 = vmatpush.msra.mxu0 %v27_v36  ;;  %v53_v49 = vld [vmem:[%s382_s1 + $0x140] sm:$0xff]  ;;  %v50_v51 = vld [vmem:[%s382_s1 + $0x128] sm:$0xff]  ;;  %v51_v53 = vld [vmem:[%s382_s1 + $0x130] sm:$0xff] }
  0x13   :  { %145 = vmatpush.msra.mxu3 %v60_v31  ;;  %105 = vmatpush.msra.mxu1 %v59_v37  ;;  %v16_v54 = vld [vmem:[%s382_s1 + $0x18] sm:$0xff]  ;;  %v17_v56 = vld [vmem:[%s382_s1 + $0x20] sm:$0xff]  ;;  %v14_v58 = vld [vmem:[%s382_s1 + $0x8] sm:$0xff] }
  0x14   :  { %126 = vmatpush.msra.mxu2 %v26_v34  ;;  %86 = vmatpush.msra.mxu0 %v25_v40  ;;  %v48_v55 = vld [vmem:[%s382_s1 + $0x118] sm:$0xff]  ;;  %v49_v57 = vld [vmem:[%s382_s1 + $0x120] sm:$0xff]  ;;  %v46_v59 = vld [vmem:[%s382_s1 + $0x108] sm:$0xff] }
  0x15   :  { %146 = vmatpush.msra.mxu3 %v58_v35  ;;  %106 = vmatpush.msra.mxu1 %v57_v41  ;;  %v11_v60 = vld [vmem:[%s383_s0] sm:$0xff]  ;;  %v12_v61 = vld [vmem:[%s383_s0 + $0x8] sm:$0xff]  ;;  %v15_v62 = vld [vmem:[%s382_s1 + $0x10] sm:$0xff] }
  0x16   :  { %127 = vmatpush.msra.mxu2 %v24_v38  ;;  %87 = vmatpush.msra.mxu0 %v23_v44  ;;  %v47_v63 = vld [vmem:[%s382_s1 + $0x110] sm:$0xff]  ;;  %v13_v0 = vld [vmem:[%s382_s1] sm:$0xff] }
  0x17   :  { %147 = vmatpush.msra.mxu3 %v56_v39  ;;  %107 = vmatpush.msra.mxu1 %v55_v45  ;;  %v45_v1 = vld [vmem:[%s382_s1 + $0x100] sm:$0xff] }
  0x18   :  { %128 = vmatpush.msra.mxu2 %v22_v42  ;;  %88 = vmatpush.msra.mxu0 %v21_v48 }
  0x19   :  { %148 = vmatpush.msra.mxu3 %v54_v43  ;;  %108 = vmatpush.msra.mxu1 %v53_v49 }
  0x1a   :  { %129 = vmatpush.msra.mxu2 %v20_v46  ;;  %89 = vmatpush.msra.mxu0 %v19_v52 }
  0x1b   :  { %149 = vmatpush.msra.mxu3 %v52_v47  ;;  %109 = vmatpush.msra.mxu1 %v51_v53 }
  0x1c   :  { %130 = vmatpush.msra.mxu2 %v18_v50  ;;  %90 = vmatpush.msra.mxu0 %v17_v56 }
  0x1d   :  { %150 = vmatpush.msra.mxu3 %v50_v51  ;;  %110 = vmatpush.msra.mxu1 %v49_v57 }
  0x1e   :  { %131 = vmatpush.msra.mxu2 %v16_v54  ;;  %91 = vmatpush.msra.mxu0 %v15_v62 }
  0x1f   :  { %151 = vmatpush.msra.mxu3 %v48_v55  ;;  %111 = vmatpush.msra.mxu1 %v47_v63 }
  0x20   :  { %132 = vmatpush.msra.mxu2 %v14_v58  ;;  %92 = vmatpush.msra.mxu0 %v13_v0 }
  0x21   :  { %152 = vmatpush.msra.mxu3 %v46_v59  ;;  %133 = vmatmul.f32.vlgmr.msra.gmra.mxu2 %v11_v60 }
  0x22   :  { %153 = vmatmul.f32.vlgmr.msra.gmra.mxu3 %v12_v61  ;;  %112 = vmatpush.msra.mxu1 %v45_v1 }
  0x23   :  { %93 = vmatmul.f32.vlgmr.msra.gmra.mxu0 %v11_v60  ;;  %113 = vmatmul.f32.vlgmr.msra.gmra.mxu1 %v12_v61 }
  0xa0   :  { %v94_v2 = vpop.f32.mrf.mxu0  ;;  %v114_v3 = vpop.f32.mrf.mxu1 }
  0xa1   :  { %v115_v4 = vadd.f32 %v114_v3, %v94_v2 }
  0xa3   :  { %157 = vst [vmem:[%s384_s2] sm:$0xff] %v115_v4 }
  0xa4   :  { %v134_v5 = vpop.f32.mrf.mxu2 }
  0xa5   :  { %v154_v6 = vpop.f32.mrf.mxu3 }
  0xa6   :  { %v155_v7 = vadd.f32 %v154_v6, %v134_v5 }
  0xa8   :  { %158 = vst [vmem:[%s384_s2 + $0x8] sm:$0xff] %v155_v7 }

// kernel: reverse.1
= control target key start
LH: loop header
LB: loop body
LE: loop exit
PB: predicated region body
PF: predicated region fallthrough
CT: control target
= control target key end

     0   :  { %v72_v3 = vlaneseq  ;;  %v65_v6 = vld [vmem:[#allocation0 + $0x7] ss:$-1 sm:$0xff]  ;;  %v79_v8 = vld [vmem:[#allocation0 + $0x17] ss:$-1 sm:$0xff]  ;;  %s331_s0 = inlined_call_operand.vmem [shape: f32[2,4,16,7], index: 0, kind: input, shape index: {}]   ;;  %s332_s1 = inlined_call_operand.vmem [shape: f32[2,4,16,7], index: 1, kind: output, shape index: {}]  }
   0x1   :  { %v45_v0 = vld [vmem:[%s331_s0] sm:$0xff]  ;;  %v47_v1 = vld [vmem:[%s331_s0 + $0x8] sm:$0xff]  ;;  %v49_v2 = vld [vmem:[%s331_s0 + $0x10] sm:$0xff]  ;;  %v66_v12 = vrot.slane %v65_v6, 1  ;;  %v80_v13 = vrot.slane %v79_v8, 1 }
   0x2   :  { %46 = vst [vmem:[#allocation0 + $0x8] sm:$0xff] %v45_v0  ;;  %v51_v4 = vld [vmem:[%s331_s0 + $0x18] sm:$0xff]  ;;  %v53_v5 = vld [vmem:[%s331_s0 + $0x20] sm:$0xff]  ;;  %v55_v7 = vld [vmem:[%s331_s0 + $0x28] sm:$0xff]  ;;  %v73_v10 = vshrl.u32 %v72_v3, 7 }
   0x3   :  { %48 = vst [vmem:[#allocation0 + $0x18] sm:$0xff] %v47_v1  ;;  %v57_v9 = vld [vmem:[%s331_s0 + $0x30] sm:$0xff]  ;;  %v59_v11 = vld [vmem:[%s331_s0 + $0x38] sm:$0xff]  ;;  %v93_v14 = vld [vmem:[#allocation0 + $0x27] ss:$-1 sm:$0xff] }
   0x4   :  { %50 = vst [vmem:[#allocation0 + $0x28] sm:$0xff] %v49_v2  ;;  %vm74_vm0 = vcmp.lt.s32.totalorder %v73_v10, 7  ;;  %v107_v16 = vld [vmem:[#allocation0 + $0x37] ss:$-1 sm:$0xff]  ;;  %v94_v19 = vrot.slane %v93_v14, 1 }
   0x5   :  { %52 = vst [vmem:[#allocation0 + $0x38] sm:$0xff] %v51_v4  ;;  %v121_v22 = vld [vmem:[#allocation0 + $0x47] ss:$-1 sm:$0xff]  ;;  %v108_v24 = vrot.slane %v107_v16, 1  ;;  %v135_v28 = vld [vmem:[#allocation0 + $0x57] ss:$-1 sm:$0xff] }
   0x6   :  { %54 = vst [vmem:[#allocation0 + $0x48] sm:$0xff] %v53_v5  ;;  %v122_v29 = vrot.slane %v121_v22, 1  ;;  %v149_v32 = vld [vmem:[#allocation0 + $0x67] ss:$-1 sm:$0xff]  ;;  %v136_v33 = vrot.slane %v135_v28, 1 }
   0x7   :  { %56 = vst [vmem:[#allocation0 + $0x58] sm:$0xff] %v55_v7  ;;  %v163_v36 = vld [vmem:[#allocation0 + $0x77] ss:$-1 sm:$0xff]  ;;  %v150_v37 = vrot.slane %v149_v32, 1 }
   0x8   :  { %58 = vst [vmem:[#allocation0 + $0x68] sm:$0xff] %v57_v9  ;;  %v164_v40 = vrot.slane %v163_v36, 1 }
   0x9   :  { %60 = vst [vmem:[#allocation0 + $0x78] sm:$0xff] %v59_v11  ;;  %v70_v15 = vld [vmem:[#allocation0 + $0xf] ss:$-1 sm:$0xff] }
   0xa   :  { %67 = vst [vmem:[#allocation1] sm:$0xff] %v66_v12  ;;  %v71_v17 = vrot.slane %v70_v15, 1  ;;  %v84_v18 = vld [vmem:[#allocation0 + $0x1f] ss:$-1 sm:$0xff] }
   0xb   :  { %81 = vst [vmem:[#allocation1 + $0x8] sm:$0xff] %v80_v13  ;;  %v85_v20 = vrot.slane %v84_v18, 1  ;;  %v98_v21 = vld [vmem:[#allocation0 + $0x2f] ss:$-1 sm:$0xff] }
   0xc   :  { %75 = vst.msk [vmem:[#allocation1] sm:$0xff] %vm74_vm0, %v71_v17  ;;  %v99_v23 = vrot.slane %v98_v21, 1  ;;  %v112_v25 = vld [vmem:[#allocation0 + $0x3f] ss:$-1 sm:$0xff] }
   0xd   :  { %89 = vst.msk [vmem:[#allocation1 + $0x8] sm:$0xff] %vm74_vm0, %v85_v20  ;;  %v113_v26 = vrot.slane %v112_v25, 1  ;;  %v126_v27 = vld [vmem:[#allocation0 + $0x4f] ss:$-1 sm:$0xff] }
   0xe   :  { %95 = vst [vmem:[#allocation1 + $0x10] sm:$0xff] %v94_v19  ;;  %v140_v30 = vld [vmem:[#allocation0 + $0x5f] ss:$-1 sm:$0xff]  ;;  %v127_v31 = vrot.slane %v126_v27, 1 }
   0xf   :  { %103 = vst.msk [vmem:[#allocation1 + $0x10] sm:$0xff] %vm74_vm0, %v99_v23  ;;  %v154_v34 = vld [vmem:[#allocation0 + $0x6f] ss:$-1 sm:$0xff]  ;;  %v141_v35 = vrot.slane %v140_v30, 1 }
  0x10   :  { %109 = vst [vmem:[#allocation1 + $0x18] sm:$0xff] %v108_v24  ;;  %v168_v38 = vld [vmem:[#allocation0 + $0x7f] ss:$-1 sm:$0xff]  ;;  %v155_v39 = vrot.slane %v154_v34, 1 }
  0x11   :  { %117 = vst.msk [vmem:[#allocation1 + $0x18] sm:$0xff] %vm74_vm0, %v113_v26  ;;  %v169_v41 = vrot.slane %v168_v38, 1 }
  0x12   :  { %123 = vst [vmem:[#allocation1 + $0x20] sm:$0xff] %v122_v29 }
  0x13   :  { %131 = vst.msk [vmem:[#allocation1 + $0x20] sm:$0xff] %vm74_vm0, %v127_v31  ;;  %v216_v42 = vld [vmem:[#allocation1] sm:$0xff] }
  0x14   :  { %137 = vst [vmem:[#allocation1 + $0x28] sm:$0xff] %v136_v33  ;;  %v218_v43 = vld [vmem:[#allocation1 + $0x8] sm:$0xff] }
  0x15   :  { %145 = vst.msk [vmem:[#allocation1 + $0x28] sm:$0xff] %vm74_vm0, %v141_v35 }
  0x16   :  { %151 = vst [vmem:[#allocation1 + $0x30] sm:$0xff] %v150_v37  ;;  %v220_v44 = vld [vmem:[#allocation1 + $0x10] sm:$0xff] }
  0x17   :  { %159 = vst.msk [vmem:[#allocation1 + $0x30] sm:$0xff] %vm74_vm0, %v155_v39 }
  0x18   :  { %165 = vst [vmem:[#allocation1 + $0x38] sm:$0xff] %v164_v40  ;;  %v222_v45 = vld [vmem:[#allocation1 + $0x18] sm:$0xff] }
  0x19   :  { %173 = vst.msk [vmem:[#allocation1 + $0x38] sm:$0xff] %vm74_vm0, %v169_v41 }
  0x1a   :  { %217 = vst [vmem:[%s332_s1] sm:$0xff] %v216_v42  ;;  %v224_v46 = vld [vmem:[#allocation1 + $0x20] sm:$0xff] }
  0x1b   :  { %219 = vst [vmem:[%s332_s1 + $0x8] sm:$0xff] %v218_v43 }
  0x1c   :  { %221 = vst [vmem:[%s332_s1 + $0x10] sm:$0xff] %v220_v44  ;;  %v226_v47 = vld [vmem:[#allocation1 + $0x28] sm:$0xff] }
  0x1d   :  { %223 = vst [vmem:[%s332_s1 + $0x18] sm:$0xff] %v222_v45 }
  0x1e   :  { %225 = vst [vmem:[%s332_s1 + $0x20] sm:$0xff] %v224_v46  ;;  %v228_v48 = vld [vmem:[#allocation1 + $0x30] sm:$0xff] }
  0x1f   :  { %227 = vst [vmem:[%s332_s1 + $0x28] sm:$0xff] %v226_v47 }
  0x20   :  { %229 = vst [vmem:[%s332_s1 + $0x30] sm:$0xff] %v228_v48  ;;  %v230_v49 = vld [vmem:[#allocation1 + $0x38] sm:$0xff] }
  0x21   :  { %231 = vst [vmem:[%s332_s1 + $0x38] sm:$0xff] %v230_v49 }

</bundles_post_ra>
